<compile_context>
chip_gen: v7x
topology: tpu7x:2x2x1
jax: 0.10.0
libtpu: 0.0.40
codegen_flags: <defaults>
</compile_context>

<pallas_src>
import functools

import jax
import jax.numpy as jnp
from jax import lax
from jax.experimental import pallas as pl
from jax.experimental.pallas import tpu as pltpu

LANES = 128


def _round_up(x, m):
    return (x + m - 1) // m * m


# ---------------------------------------------------------------------------
# Fused MXU matmul kernels: y = (x @ w) * scale + bias [+ residual] [ReLU]
# Accumulation happens directly in the k-invariant f32 output block.
# ---------------------------------------------------------------------------
def _mm_kernel(x_ref, w_ref, s_ref, b_ref, o_ref, *, relu):
    @pl.when(pl.program_id(2) == 0)
    def _():
        o_ref[...] = jnp.zeros_like(o_ref)

    o_ref[...] += jnp.dot(x_ref[...], w_ref[...],
                          preferred_element_type=jnp.float32)

    @pl.when(pl.program_id(2) == pl.num_programs(2) - 1)
    def _():
        y = o_ref[...] * s_ref[...] + b_ref[...]
        if relu:
            y = jnp.maximum(y, 0.0)
        o_ref[...] = y


def _mm_res_kernel(x_ref, w_ref, s_ref, b_ref, r_ref, o_ref, *, relu):
    @pl.when(pl.program_id(2) == 0)
    def _():
        o_ref[...] = jnp.zeros_like(o_ref)

    o_ref[...] += jnp.dot(x_ref[...], w_ref[...],
                          preferred_element_type=jnp.float32)

    @pl.when(pl.program_id(2) == pl.num_programs(2) - 1)
    def _():
        y = o_ref[...] * s_ref[...] + b_ref[...] + r_ref[...]
        if relu:
            y = jnp.maximum(y, 0.0)
        o_ref[...] = y


def _pick_tiles(M, Kp, Np):
    """Adaptive (tm, Mp, tn, tk). Kp, Np are already multiples of 128."""
    # rows
    if M <= 512:
        Mp = _round_up(M, 16)          # 16 = bf16 sublane pack
        tm = Mp
    else:
        pad512 = _round_up(M, 512) - M
        pad256 = _round_up(M, 256) - M
        tm = 512 if pad512 <= pad256 + 128 else 256
        Mp = _round_up(M, tm)
    # lanes (never below 128)
    if Np % 512 == 0 and Np >= 1024:
        tn = 512
    elif Np % 256 == 0:
        tn = 256
    else:
        tn = 128
    # contraction: largest multiple of 128 <= 2048 that divides Kp
    if Kp <= 2048:
        tk = Kp
    else:
        tk = 128
        for cand in range(2048, 127, -128):
            if Kp % cand == 0:
                tk = cand
                break
    # keep >= 2 blocks in the parallel (i, j) grid (v7x has 2 TensorCores)
    if (Mp // tm) * (Np // tn) < 2:
        if tn >= 256:
            tn //= 2
        elif tm >= 32 and tm % 32 == 0:
            tm //= 2
    return tm, Mp, tn, tk


@functools.partial(jax.jit, static_argnames=("n_true", "relu"))
def _matmul_fused(x, w, scale, bias, residual, *, n_true, relu):
    """x:(M,K) any float; w:(Kp,Np) bf16 pre-packed; scale/bias:(1,Np) f32;
    residual:(M,n_true) f32 or None. Returns (M,n_true) f32."""
    M, K = x.shape
    Kp, Np = w.shape
    tm, Mp, tn, tk = _pick_tiles(M, Kp, Np)

    xp = jnp.pad(x.astype(jnp.bfloat16), ((0, Mp - M), (0, Kp - K)))

    in_specs = [
        pl.BlockSpec((tm, tk), lambda i, j, k: (i, k)),
        pl.BlockSpec((tk, tn), lambda i, j, k: (k, j)),
        pl.BlockSpec((1, tn), lambda i, j, k: (0, j)),
        pl.BlockSpec((1, tn), lambda i, j, k: (0, j)),
    ]
    args = [xp, w, scale, bias]
    if residual is None:
        kernel = functools.partial(_mm_kernel, relu=relu)
    else:
        rp = jnp.pad(residual.astype(jnp.float32),
                     ((0, Mp - M), (0, Np - residual.shape[1])))
        in_specs.append(pl.BlockSpec((tm, tn), lambda i, j, k: (i, j)))
        args.append(rp)
        kernel = functools.partial(_mm_res_kernel, relu=relu)

    out = pl.pallas_call(
        kernel,
        out_shape=jax.ShapeDtypeStruct((Mp, Np), jnp.float32),
        grid_spec=pltpu.PrefetchScalarGridSpec(
            num_scalar_prefetch=0,
            grid=(Mp // tm, Np // tn, Kp // tk),
            in_specs=in_specs,
            out_specs=pl.BlockSpec((tm, tn), lambda i, j, k: (i, j)),
        ),
        compiler_params=pltpu.CompilerParams(
            dimension_semantics=("parallel", "parallel", "arbitrary")),
    )(*args)
    return out[:M, :n_true]


# ---------------------------------------------------------------------------
# NHWC conv / transposed-conv wrappers built on the fused matmul.
# ---------------------------------------------------------------------------
@functools.partial(jax.jit,
                   static_argnames=("kh", "kw", "stride", "padding", "cout", "relu"))
def conv2d_nhwc(x, w, scale, bias, residual=None, *, kh, kw, stride, padding,
                cout, relu):
    """Conv2d (folded BN / bias, optional fused residual-add + ReLU), NHWC."""
    N, H, W, C = x.shape
    Ho = (H + 2 * padding - kh) // stride + 1
    Wo = (W + 2 * padding - kw) // stride + 1
    xb = x.astype(jnp.bfloat16)
    if kh == 1 and kw == 1 and padding == 0 and stride == 1:
        p = xb.reshape(N * H * W, C)
    else:
        xp = jnp.pad(xb, ((0, 0), (padding, padding), (padding, padding), (0, 0)))
        cols = []
        for dy in range(kh):
            for dx in range(kw):
                cols.append(lax.slice(
                    xp, (0, dy, dx, 0),
                    (N, dy + stride * (Ho - 1) + 1, dx + stride * (Wo - 1) + 1, C),
                    (1, stride, stride, 1)))
        p = jnp.concatenate(cols, axis=-1).reshape(N * Ho * Wo, kh * kw * C)
    r = None if residual is None else residual.reshape(N * Ho * Wo, cout)
    y = _matmul_fused(p, w, scale, bias, r, n_true=cout, relu=relu)
    return y.reshape(N, Ho, Wo, cout)


@functools.partial(jax.jit, static_argnames=("cout",))
def conv_transpose2_nhwc(x, w, b, *, cout):
    """ConvTranspose2d(Cin, cout, kernel=2, stride=2) as matmul + depth-to-space."""
    N, H, W, C = x.shape
    Np = w.shape[1]
    s = jnp.ones((1, Np), jnp.float32)
    bc = jnp.pad(jnp.tile(b, 4), (0, Np - 4 * cout)).reshape(1, Np)
    y = _matmul_fused(x.reshape(N * H * W, C), w, s, bc, None,
                      n_true=4 * cout, relu=False)
    y = y.reshape(N, H, W, 2, 2, cout).transpose(0, 1, 3, 2, 4, 5)
    return y.reshape(N, 2 * H, 2 * W, cout)


@functools.partial(jax.jit, static_argnames=("cout", "ksize"))
def conv_transpose_k_s1_nhwc(x, w, b, *, cout, ksize):
    """ConvTranspose2d(Cin, cout, kernel=ksize, stride=1): one matmul producing
    a ksize x ksize patch per input pixel, then overlap-add (H, W are tiny)."""
    N, H, W, C = x.shape
    Np = w.shape[1]
    s = jnp.ones((1, Np), jnp.float32)
    z = jnp.zeros((1, Np), jnp.float32)
    y = _matmul_fused(x.reshape(N * H * W, C), w, s, z, None,
                      n_true=ksize * ksize * cout, relu=False)
    y = y.reshape(N, H, W, ksize, ksize, cout)
    Ho, Wo = H + ksize - 1, W + ksize - 1
    out = jnp.zeros((N, Ho, Wo, cout), jnp.float32)
    for i in range(H):
        for j in range(W):
            out = out.at[:, i:i + ksize, j:j + ksize, :].add(y[:, i, j])
    return out + b[None, None, None, :]


# ---------------------------------------------------------------------------
# MaxPool2d(3, 2, 1) — lane-dense 9-tap max kernel (single small tensor).
# ---------------------------------------------------------------------------
def _slab(flat_len):
    max_rows = 1024
    if flat_len >= max_rows * LANES:
        padded = _round_up(flat_len, max_rows * LANES)
        tile_rows = max_rows
    else:
        padded = _round_up(flat_len, 8 * LANES)
        tile_rows = padded // LANES
    return padded, tile_rows


def _max9_kernel(x_ref, o_ref):
    m = x_ref[0]
    for k in range(1, 9):
        m = jnp.maximum(m, x_ref[k])
    o_ref[...] = m


@jax.jit
def maxpool_3x3_s2_nhwc(x):
    N, H, W, C = x.shape
    Ho = (H + 2 - 3) // 2 + 1
    Wo = (W + 2 - 3) // 2 + 1
    neg = jnp.finfo(jnp.float32).min
    xp = jnp.pad(x, ((0, 0), (1, 1), (1, 1), (0, 0)), constant_values=neg)
    windows = []
    for dy in range(3):
        for dx in range(3):
            windows.append(lax.slice(
                xp, (0, dy, dx, 0),
                (N, dy + 2 * (Ho - 1) + 1, dx + 2 * (Wo - 1) + 1, C),
                (1, 2, 2, 1)).reshape(-1))
    stack = jnp.stack(windows, axis=0)
    n = stack.shape[1]
    padded, tr = _slab(n)
    rows = padded // LANES
    stack = jnp.pad(stack, ((0, 0), (0, padded - n)), constant_values=neg)
    stack = stack.reshape(9, rows, LANES)
    out = pl.pallas_call(
        _max9_kernel,
        out_shape=jax.ShapeDtypeStruct((rows, LANES), jnp.float32),
        grid=(rows // tr,),
        in_specs=[pl.BlockSpec((9, tr, LANES), lambda i: (0, i, 0))],
        out_specs=pl.BlockSpec((tr, LANES), lambda i: (i, 0)),
        compiler_params=pltpu.CompilerParams(dimension_semantics=("parallel",)),
    )(stack)
    return out.reshape(-1)[:n].reshape(N, Ho, Wo, C)


# ---------------------------------------------------------------------------
# Parameters (deterministic random init, eval-mode BN folded to affine).
# ---------------------------------------------------------------------------
class _Keys:
    def __init__(self, seed):
        self._key = jax.random.PRNGKey(seed)

    def __call__(self):
        self._key, sub = jax.random.split(self._key)
        return sub


def _conv_w(kg, cout, cin, kh, kw):
    fan_in = cin * kh * kw
    return jax.random.normal(kg(), (cout, cin, kh, kw), jnp.float32) * (2.0 / fan_in) ** 0.5


def _convT_w(kg, cin, cout, k):
    fan_in = cin * k * k
    return jax.random.normal(kg(), (cin, cout, k, k), jnp.float32) * (2.0 / fan_in) ** 0.5


def _affine(kg, c):
    scale = 1.0 + 0.1 * jax.random.normal(kg(), (c,), jnp.float32)
    shift = 0.1 * jax.random.normal(kg(), (c,), jnp.float32)
    return scale, shift


def _bias(kg, c):
    return 0.1 * jax.random.normal(kg(), (c,), jnp.float32)


def _conv_block(kg, cin, cout):
    return dict(w1=_conv_w(kg, cout, cin, 3, 3), a1=_affine(kg, cout),
                w2=_conv_w(kg, cout, cout, 3, 3), a2=_affine(kg, cout))


def _basic_block(kg, cin, cout, stride):
    p = dict(stride=stride,
             w1=_conv_w(kg, cout, cin, 3, 3), a1=_affine(kg, cout),
             w2=_conv_w(kg, cout, cout, 3, 3), a2=_affine(kg, cout))
    if stride != 1 or cin != cout:
        p["wd"] = _conv_w(kg, cout, cin, 1, 1)
        p["ad"] = _affine(kg, cout)
    return p


def _upconv(kg, cin, cout):
    return dict(wt=_convT_w(kg, cin, cin, 2), bt=_bias(kg, cin),
                cb=_conv_block(kg, cin, cout))


def make_params(kg, out_channels=3):
    params = dict(conv1=_conv_w(kg, 64, 3, 7, 7), bn1=_affine(kg, 64))
    layers, cin = [], 64
    for planes, nblocks, stride in ((64, 3, 1), (128, 4, 2), (256, 6, 2), (512, 3, 2)):
        blocks = []
        for b in range(nblocks):
            blocks.append(_basic_block(kg, cin, planes, stride if b == 0 else 1))
            cin = planes
        layers.append(blocks)
    params["layers"] = layers
    params["bottleneck"] = _conv_block(kg, 512, 1024)
    params["up_resize"] = dict(wt=_convT_w(kg, 1024, 512, 8), bt=_bias(kg, 512))
    params["ups"] = [_upconv(kg, 512, 256), _upconv(kg, 256, 128), _upconv(kg, 128, 64)]
    params["out_up"] = _upconv(kg, 64, 32)
    params["out_w"] = _conv_w(kg, out_channels, 32, 1, 1)
    params["out_b"] = _bias(kg, out_channels)
    return params


# ---------------------------------------------------------------------------
# One-time weight packing (transpose / pad / bf16-cast outside jit).
# ---------------------------------------------------------------------------
def _pack_conv(w, scale, bias):
    cout, cin, kh, kw = w.shape
    K = kh * kw * cin
    wm = w.transpose(2, 3, 1, 0).reshape(K, cout)        # K order = (dy, dx, cin)
    Kp, Np = _round_up(K, 128), _round_up(cout, 128)
    return dict(
        w=jnp.pad(wm, ((0, Kp - K), (0, Np - cout))).astype(jnp.bfloat16),
        s=jnp.pad(scale.astype(jnp.float32), (0, Np - cout)).reshape(1, Np),
        b=jnp.pad(bias.astype(jnp.float32), (0, Np - cout)).reshape(1, Np),
        kh=kh, kw=kw, cout=cout)


def _pack_convT(w, b):
    cin, cout, k, _ = w.shape
    ncol = k * k * cout
    wm = w.transpose(0, 2, 3, 1).reshape(cin, ncol)       # col order = (ky, kx, co)
    Kp, Np = _round_up(cin, 128), _round_up(ncol, 128)
    return dict(
        w=jnp.pad(wm, ((0, Kp - cin), (0, Np - ncol))).astype(jnp.bfloat16),
        b=b.astype(jnp.float32), cout=cout, k=k)


def pack_params(params):
    def pack_cb(cb):
        return dict(c1=_pack_conv(cb["w1"], *cb["a1"]),
                    c2=_pack_conv(cb["w2"], *cb["a2"]))

    pk = dict(conv1=_pack_conv(params["conv1"], *params["bn1"]))
    layers = []
    for blocks in params["layers"]:
        pbs = []
        for p in blocks:
            d = dict(stride=p["stride"],
                     c1=_pack_conv(p["w1"], *p["a1"]),
                     c2=_pack_conv(p["w2"], *p["a2"]))
            if "wd" in p:
                d["down"] = _pack_conv(p["wd"], *p["ad"])
            pbs.append(d)
        layers.append(pbs)
    pk["layers"] = layers
    pk["bottleneck"] = pack_cb(params["bottleneck"])
    pk["up_resize"] = _pack_convT(params["up_resize"]["wt"], params["up_resize"]["bt"])
    pk["ups"] = [dict(t=_pack_convT(p["wt"], p["bt"]), **pack_cb(p["cb"]))
                 for p in params["ups"]]
    p = params["out_up"]
    pk["out_up"] = dict(t=_pack_convT(p["wt"], p["bt"]), **pack_cb(p["cb"]))
    cout = params["out_w"].shape[0]
    pk["out_conv"] = _pack_conv(params["out_w"], jnp.ones((cout,), jnp.float32),
                                params["out_b"])
    return pk


def _run_conv(x, p, *, stride, padding, relu, residual=None):
    return conv2d_nhwc(x, p["w"], p["s"], p["b"], residual,
                       kh=p["kh"], kw=p["kw"], stride=stride, padding=padding,
                       cout=p["cout"], relu=relu)


# ---------------------------------------------------------------------------
# Pallas forward (NCHW in/out; NHWC internally).
# ---------------------------------------------------------------------------
def forward_pallas(x_nchw, pk):
    o = jnp.transpose(x_nchw, (0, 2, 3, 1))                       # NHWC
    o = _run_conv(o, pk["conv1"], stride=2, padding=3, relu=True)
    o = maxpool_3x3_s2_nhwc(o)
    # ResNet34 layers (residual add + ReLU fused into the 2nd conv's epilogue)
    for blocks in pk["layers"]:
        for p in blocks:
            s = p["stride"]
            h = _run_conv(o, p["c1"], stride=s, padding=1, relu=True)
            idt = (_run_conv(o, p["down"], stride=s, padding=0, relu=False)
                   if "down" in p else o)
            o = _run_conv(h, p["c2"], stride=1, padding=1, relu=True, residual=idt)
    # Bottleneck ConvBlock(512, 1024)
    o = _run_conv(o, pk["bottleneck"]["c1"], stride=1, padding=1, relu=True)
    o = _run_conv(o, pk["bottleneck"]["c2"], stride=1, padding=1, relu=True)
    # Decoder: UpConvResize(1024,512) then UpConv(512,256)/(256,128)/(128,64)
    t = pk["up_resize"]
    o = conv_transpose_k_s1_nhwc(o, t["w"], t["b"], cout=t["cout"], ksize=t["k"])
    for p in pk["ups"] + [pk["out_up"]]:
        t = p["t"]
        o = conv_transpose2_nhwc(o, t["w"], t["b"], cout=t["cout"])
        o = _run_conv(o, p["c1"], stride=1, padding=1, relu=True)
        o = _run_conv(o, p["c2"], stride=1, padding=1, relu=True)
    # Output head: Conv2d(32, out_channels, 1)
    o = _run_conv(o, pk["out_conv"], stride=1, padding=0, relu=False)
    return jnp.transpose(o, (0, 3, 1, 2))                          # NCHW


# ---------------------------------------------------------------------------
# Pure-XLA f32 reference (NCHW) for correctness checking.
# ---------------------------------------------------------------------------
def _ref_conv(x, w, scale, bias, *, stride, padding, relu):
    y = lax.conv_general_dilated(
        x, w, (stride, stride), ((padding, padding), (padding, padding)),
        dimension_numbers=("NCHW", "OIHW", "NCHW"), precision=lax.Precision.HIGHEST)
    y = y * scale[None, :, None, None] + bias[None, :, None, None]
    return jnp.maximum(y, 0.0) if relu else y


def _ref_convT(x, w, b, *, k, pad):
    wf = jnp.flip(w, (2, 3)).transpose(1, 0, 2, 3)
    lhs_dil = (2, 2) if k == 2 else (1, 1)
    y = lax.conv_general_dilated(
        x, wf, (1, 1), ((pad, pad), (pad, pad)), lhs_dilation=lhs_dil,
        dimension_numbers=("NCHW", "OIHW", "NCHW"), precision=lax.Precision.HIGHEST)
    return y + b[None, :, None, None]


def _ref_maxpool(x):
    return lax.reduce_window(x, -jnp.inf, lax.max, (1, 1, 3, 3), (1, 1, 2, 2),
                             ((0, 0), (0, 0), (1, 1), (1, 1)))


def forward_reference(x, params):
    o = _ref_conv(x, params["conv1"], *params["bn1"], stride=2, padding=3, relu=True)
    o = _ref_maxpool(o)
    for blocks in params["layers"]:
        for p in blocks:
            s = p["stride"]
            h = _ref_conv(o, p["w1"], *p["a1"], stride=s, padding=1, relu=True)
            h = _ref_conv(h, p["w2"], *p["a2"], stride=1, padding=1, relu=False)
            idt = (_ref_conv(o, p["wd"], *p["ad"], stride=s, padding=0, relu=False)
                   if "wd" in p else o)
            o = jnp.maximum(h + idt, 0.0)
    bb = params["bottleneck"]
    o = _ref_conv(o, bb["w1"], *bb["a1"], stride=1, padding=1, relu=True)
    o = _ref_conv(o, bb["w2"], *bb["a2"], stride=1, padding=1, relu=True)
    o = _ref_convT(o, params["up_resize"]["wt"], params["up_resize"]["bt"], k=8, pad=7)
    for p in params["ups"] + [params["out_up"]]:
        o = _ref_convT(o, p["wt"], p["bt"], k=2, pad=1)
        cb = p["cb"]
        o = _ref_conv(o, cb["w1"], *cb["a1"], stride=1, padding=1, relu=True)
        o = _ref_conv(o, cb["w2"], *cb["a2"], stride=1, padding=1, relu=True)
    cout = params["out_w"].shape[0]
    o = _ref_conv(o, params["out_w"], jnp.ones((cout,), jnp.float32), params["out_b"],
                  stride=1, padding=0, relu=False)
    return o


if __name__ == "__main__":
    kg = _Keys(0)                                 # jax.random.PRNGKey(0)
    params = make_params(kg)
    packed = pack_params(params)
    # Smallest spatial size compatible with the ResNet34 encoder (stride 32).
    x = jax.random.normal(kg(), (2, 3, 64, 64), jnp.float32)

    out = jax.block_until_ready(forward_pallas(x, packed))
    ref = jax.block_until_ready(forward_reference(x, params))

    assert out.shape == ref.shape == (2, 3, 144, 144), out.shape
    assert bool(jnp.all(jnp.isfinite(out)))
    rel = float(jnp.linalg.norm(out - ref) / (jnp.linalg.norm(ref) + 1e-12))
    # bf16 MXU inputs with f32 accumulation: small, bounded numerical drift.
    assert rel < 1e-1, f"relative error too large: {rel}"
    print("KERNEL_OK")
</pallas_src>

<mosaic_0001>
module attributes {stable_mosaic.version = 11 : i64} {
  func.func @_mm_kernel(%arg0: i32, %arg1: i32, %arg2: i32, %arg3: memref<512x256xbf16, #tpu.memory_space<vmem>>, %arg4: memref<256x128xbf16, #tpu.memory_space<vmem>>, %arg5: memref<1x128xf32, #tpu.memory_space<vmem>>, %arg6: memref<1x128xf32, #tpu.memory_space<vmem>>, %arg7: memref<512x128xf32, #tpu.memory_space<vmem>>) attributes {dimension_semantics = [#tpu.dimension_semantics<parallel>, #tpu.dimension_semantics<parallel>, #tpu.dimension_semantics<arbitrary>], iteration_bounds = array<i64: 4, 1, 1>, scalar_prefetch = 0 : i64, scratch_operands = 0 : i64, tpu.core_type = #tpu.core_type<tc>, window_params = [{transform_indices = @transform_0, window_bounds = array<i64: 512, 256>}, {transform_indices = @transform_1, window_bounds = array<i64: 256, 128>}, {transform_indices = @transform_2, window_bounds = array<i64: 1, 128>}, {transform_indices = @transform_3, window_bounds = array<i64: 1, 128>}, {transform_indices = @transform_4, window_bounds = array<i64: 512, 128>}]} {
    %c0_i32 = arith.constant 0 : i32
    %0 = arith.cmpi eq, %arg2, %c0_i32 : i32
    %1 = arith.extui %0 : i1 to i32
    %c0_i32_0 = arith.constant 0 : i32
    %2 = arith.cmpi ne, %1, %c0_i32_0 : i32
    scf.if %2 {
      %cst_10 = arith.constant 0.000000e+00 : f32
      %12 = vector.broadcast %cst_10 : f32 to vector<512x128xf32>
      %c0_11 = arith.constant 0 : index
      %c0_12 = arith.constant 0 : index
      %13 = vector.load %arg7[%c0_11, %c0_12] : memref<512x128xf32, #tpu.memory_space<vmem>>, vector<512x128xf32>
      tpu.vector_store %arg7[%c0_11, %c0_12], %12 {strides = array<i32>} : memref<512x128xf32, #tpu.memory_space<vmem>>, vector<512x128xf32>,
    } else {
    }
    %c0 = arith.constant 0 : index
    %c0_1 = arith.constant 0 : index
    %3 = vector.load %arg7[%c0, %c0_1] : memref<512x128xf32, #tpu.memory_space<vmem>>, vector<512x128xf32>
    %c0_2 = arith.constant 0 : index
    %c0_3 = arith.constant 0 : index
    %4 = vector.load %arg3[%c0_2, %c0_3] : memref<512x256xbf16, #tpu.memory_space<vmem>>, vector<512x256xbf16>
    %c0_4 = arith.constant 0 : index
    %c0_5 = arith.constant 0 : index
    %5 = vector.load %arg4[%c0_4, %c0_5] : memref<256x128xbf16, #tpu.memory_space<vmem>>, vector<256x128xbf16>
    %cst = arith.constant dense<0.000000e+00> : vector<512x128xf32>
    %6 = tpu.matmul %4, %5, %cst {dimension_numbers = #tpu.dot_dimension_numbers<[1], [0], [0], [1], [0, 0, 1, 1], [], []>} : vector<512x256xbf16>, vector<256x128xbf16>, vector<512x128xf32> -> vector<512x128xf32>
    %7 = arith.addf %3, %6 : vector<512x128xf32>
    %c0_6 = arith.constant 0 : index
    %c0_7 = arith.constant 0 : index
    %8 = vector.load %arg7[%c0_6, %c0_7] : memref<512x128xf32, #tpu.memory_space<vmem>>, vector<512x128xf32>
    tpu.vector_store %arg7[%c0_6, %c0_7], %7 {strides = array<i32>} : memref<512x128xf32, #tpu.memory_space<vmem>>, vector<512x128xf32>,
    %c0_i32_8 = arith.constant 0 : i32
    %9 = arith.cmpi eq, %arg2, %c0_i32_8 : i32
    %10 = arith.extui %9 : i1 to i32
    %c0_i32_9 = arith.constant 0 : i32
    %11 = arith.cmpi ne, %10, %c0_i32_9 : i32
    scf.if %11 {
      %c0_10 = arith.constant 0 : index
      %c0_11 = arith.constant 0 : index
      %12 = vector.load %arg7[%c0_10, %c0_11] : memref<512x128xf32, #tpu.memory_space<vmem>>, vector<512x128xf32>
      %c0_12 = arith.constant 0 : index
      %c0_13 = arith.constant 0 : index
      %13 = vector.load %arg5[%c0_12, %c0_13] : memref<1x128xf32, #tpu.memory_space<vmem>>, vector<1x128xf32>
      %14 = vector.broadcast %13 : vector<1x128xf32> to vector<512x128xf32>
      %15 = arith.mulf %12, %14 : vector<512x128xf32>
      %c0_14 = arith.constant 0 : index
      %c0_15 = arith.constant 0 : index
      %16 = vector.load %arg6[%c0_14, %c0_15] : memref<1x128xf32, #tpu.memory_space<vmem>>, vector<1x128xf32>
      %17 = vector.broadcast %16 : vector<1x128xf32> to vector<512x128xf32>
      %18 = arith.addf %15, %17 : vector<512x128xf32>
      %cst_16 = arith.constant 0.000000e+00 : f32
      %19 = vector.broadcast %cst_16 : f32 to vector<512x128xf32>
      %20 = arith.maximumf %18, %19 : vector<512x128xf32>
      %c0_17 = arith.constant 0 : index
      %c0_18 = arith.constant 0 : index
      %21 = vector.load %arg7[%c0_17, %c0_18] : memref<512x128xf32, #tpu.memory_space<vmem>>, vector<512x128xf32>
      tpu.vector_store %arg7[%c0_17, %c0_18], %20 {strides = array<i32>} : memref<512x128xf32, #tpu.memory_space<vmem>>, vector<512x128xf32>,
    } else {
    }
    return
  }
  func.func @transform_0(%arg0: i32, %arg1: i32, %arg2: i32) -> (i32, i32) {
    %c0_i32 = arith.constant 0 : i32
    return %arg0, %arg2 : i32, i32
  }
  func.func @transform_1(%arg0: i32, %arg1: i32, %arg2: i32) -> (i32, i32) {
    %c0_i32 = arith.constant 0 : i32
    return %arg2, %arg1 : i32, i32
  }
  func.func @transform_2(%arg0: i32, %arg1: i32, %arg2: i32) -> (i32, i32) {
    %c0_i32 = arith.constant 0 : i32
    %c0_i32_0 = arith.constant 0 : i32
    return %c0_i32, %arg1 : i32, i32
  }
  func.func @transform_3(%arg0: i32, %arg1: i32, %arg2: i32) -> (i32, i32) {
    %c0_i32 = arith.constant 0 : i32
    %c0_i32_0 = arith.constant 0 : i32
    return %c0_i32, %arg1 : i32, i32
  }
  func.func @transform_4(%arg0: i32, %arg1: i32, %arg2: i32) -> (i32, i32) {
    %c0_i32 = arith.constant 0 : i32
    return %arg0, %arg1 : i32, i32
  }
}

</mosaic_0001>

<bundles_post_ra>
// kernel: _matmul_fused.1
= control target key start
LH: loop header
LB: loop body
LE: loop exit
PB: predicated region body
PF: predicated region fallthrough
CT: control target
= control target key end

     0   :  { %s2151_s15 = smov 0   ;;  %s2153_s16 = smov 0   ;;  %s2541_s0 = inlined_call_operand.vmem [shape: bf16[2048,256], index: 0, kind: input, shape index: {}]   ;;  %s2542_s1 = inlined_call_operand.vmem [shape: bf16[256,128], index: 1, kind: input, shape index: {}]   ;;  %s2543_s2 = inlined_call_operand.vmem [shape: f32[1,128], index: 2, kind: input, shape index: {}]   ;;  %s2544_s3 = inlined_call_operand.vmem [shape: f32[1,128], index: 3, kind: input, shape index: {}]   ;;  %s2545_s4 = inlined_call_operand.vmem [shape: f32[2048,128], index: 4, kind: output, shape index: {}]  }
   0x1   :  { %s2155_s17 = smov 0  }
   0x2 LB: > { %s33_s18 = sadd.s32 1, %s2119_s16  ;;  %p1840_p0 = scmp.ge.s32.totalorder %s2123_s17, 1  ;;  %s2123_s17 = sphi %s2155_s17, %s14_s17   ;;  %s2119_s16 = sphi %s2153_s16, %s2547_s16   ;;  %s2115_s15 = sphi %s2151_s15, %s2546_s15  }
   0x3   : > { %p35_p1 = scmp.ge.s32.totalorder %s33_s18, 4  ;;  %p224_p2 = scmp.lt.s32.totalorder %s2123_s17, 5 }
   0x5   : > { %s2549_s18 = smov (%p35_p1, %s33_s18), 0  ;;  %p225_p3 = pnand %p1840_p0, %p224_p2 }
   0x6   : > { %v1989_v0 = vld [vmem:[%s2542_s1] sm:$0xff] (!%p225_p3)   ;;  %v2125_v1 = vmov (!%p225_p3), 0   ;;  %s1841_s21 = sshll.u32 (!%p225_p3), %s2115_s15, 6  ;;  %v1990_v2 = vld [vmem:[%s2542_s1 + $0x8] sm:$0xff] (!%p225_p3)   ;;  %v1991_v3 = vld [vmem:[%s2542_s1 + $0x10] sm:$0xff] (!%p225_p3)  }
   0x7   : > { %228 = sbr.rel (%p225_p3) target bundleno = 412 (0x19c), region = 36  ;;  %953 = vmatprep.subr.bf16.mxu0 (!%p225_p3), %v2125_v1  ;;  %1931 = vmatprep.subr.bf16.mxu1 (!%p225_p3), %v2125_v1  ;;  %p274_p4 = scmp.lt.s32.totalorder (!%p225_p3), %s1841_s21, 255  ;;  %v1992_v4 = vld [vmem:[%s2542_s1 + $0x18] sm:$0xff] (!%p225_p3)   ;;  %v1993_v5 = vld [vmem:[%s2542_s1 + $0x20] sm:$0xff] (!%p225_p3)   ;;  %v1994_v7 = vld [vmem:[%s2542_s1 + $0x28] sm:$0xff] (!%p225_p3)  }
   0x8   : > { %954 = vmatpush1.bf16.msra.mxu0 (!%p225_p3), %v1989_v0  ;;  %1947 = vmatpush1.bf16.msra.mxu1 (!%p225_p3), %v1989_v0  ;;  %v1995_v9 = vld [vmem:[%s2542_s1 + $0x30] sm:$0xff] (!%p225_p3)   ;;  %v1996_v10 = vld [vmem:[%s2542_s1 + $0x38] sm:$0xff] (!%p225_p3)   ;;  %v1997_v11 = vld [vmem:[%s2542_s1 + $0x40] sm:$0xff] (!%p225_p3)  }
   0x9   : > { %955 = vmatprep.subr.bf16.mxu0 (!%p225_p3), %v2125_v1  ;;  %1932 = vmatprep.subr.bf16.mxu1 (!%p225_p3), %v2125_v1  ;;  %v1998_v12 = vld [vmem:[%s2542_s1 + $0x48] sm:$0xff] (!%p225_p3)   ;;  %v1999_v13 = vld [vmem:[%s2542_s1 + $0x50] sm:$0xff] (!%p225_p3)   ;;  %v2000_v14 = vld [vmem:[%s2542_s1 + $0x58] sm:$0xff] (!%p225_p3)  }
   0xa   : > { %v2001_v15 = vld [vmem:[%s2542_s1 + $0x60] sm:$0xff] (!%p225_p3)   ;;  %v2002_v16 = vld [vmem:[%s2542_s1 + $0x68] sm:$0xff] (!%p225_p3)   ;;  %v2003_v17 = vld [vmem:[%s2542_s1 + $0x70] sm:$0xff] (!%p225_p3)  }
   0xb   : > { %v2004_v18 = vld [vmem:[%s2542_s1 + $0x78] sm:$0xff] (!%p225_p3)  }
   0xc   : > { %956 = vmatpush1.bf16.msra.mxu0 (!%p225_p3), %v1990_v2  ;;  %1948 = vmatpush1.bf16.msra.mxu1 (!%p225_p3), %v1990_v2 }
   0xd   : > { %957 = vmatprep.subr.bf16.mxu0 (!%p225_p3), %v2125_v1  ;;  %1933 = vmatprep.subr.bf16.mxu1 (!%p225_p3), %v2125_v1 }
   0xe   : > { %s2551_s21 = smov (!%p274_p4, %s1841_s21), 255 }
   0xf   : > { %s1930_s28 = sshll.u32 %s2551_s21, 3 }
  0x10   : > { %958 = vmatpush1.bf16.msra.mxu0 %v1991_v3  ;;  %1949 = vmatpush1.bf16.msra.mxu1 %v1991_v3  ;;  %s2200_s7 = scalar_lea.vmem %s2541_s0, %s1930_s28  ;;  %s2344_s15 = scalar_lea.vmem %s2545_s4, %s1930_s28 }
  0x11   : > { %959 = vmatprep.subr.bf16.mxu0 %v2125_v1  ;;  %1934 = vmatprep.subr.bf16.mxu1 %v2125_v1  ;;  %v2007_v6 = vld [vmem:[%s2200_s7 + $0x4] ss:$8 sps:$4 sm:$0xff]   ;;  %v2005_v19 = vld [vmem:[%s2200_s7] ss:$8 sps:$4 sm:$0xff]   ;;  %v2011_v21 = vld [vmem:[%s2200_s7 + $0x14] ss:$8 sps:$4 sm:$0xff]  }
  0x12   : > { %v2010_v8 = vld [vmem:[%s2200_s7 + $0x104] ss:$8 sps:$4 sm:$0xff]   ;;  %985 = vmatprep.mubr.bf16.mxu0 %v2007_v6  ;;  %v2008_v20 = vld [vmem:[%s2200_s7 + $0x100] ss:$8 sps:$4 sm:$0xff]   ;;  %v2013_v22 = vld [vmem:[%s2200_s7 + $0x114] ss:$8 sps:$4 sm:$0xff]  }
  0x13   : > { %1113 = vmatprep.mubr.bf16.mxu1 %v2010_v8  ;;  %v2015_v23 = vld [vmem:[%s2200_s7 + $0x10] ss:$8 sps:$4 sm:$0xff]   ;;  %v2017_v25 = vld [vmem:[%s2200_s7 + $0x24] ss:$8 sps:$4 sm:$0xff]   ;;  %v2021_v27 = vld [vmem:[%s2200_s7 + $0x20] ss:$8 sps:$4 sm:$0xff]  }
  0x14   : > { %960 = vmatpush1.bf16.msra.mxu0 %v1992_v4  ;;  %1950 = vmatpush1.bf16.msra.mxu1 %v1992_v4  ;;  %v2016_v24 = vld [vmem:[%s2200_s7 + $0x110] ss:$8 sps:$4 sm:$0xff]   ;;  %v2019_v26 = vld [vmem:[%s2200_s7 + $0x124] ss:$8 sps:$4 sm:$0xff]   ;;  %v2022_v28 = vld [vmem:[%s2200_s7 + $0x120] ss:$8 sps:$4 sm:$0xff]  }
  0x15   : > { %961 = vmatprep.subr.bf16.mxu0 %v2125_v1  ;;  %1935 = vmatprep.subr.bf16.mxu1 %v2125_v1  ;;  %v2023_v29 = vld [vmem:[%s2200_s7 + $0x34] ss:$8 sps:$4 sm:$0xff]   ;;  %v2027_v31 = vld [vmem:[%s2200_s7 + $0x30] ss:$8 sps:$4 sm:$0xff]   ;;  %v2029_v33 = vld [vmem:[%s2200_s7 + $0x44] ss:$8 sps:$4 sm:$0xff]  }
  0x16   : > { %v2025_v30 = vld [vmem:[%s2200_s7 + $0x134] ss:$8 sps:$4 sm:$0xff]   ;;  %v2028_v32 = vld [vmem:[%s2200_s7 + $0x130] ss:$8 sps:$4 sm:$0xff]   ;;  %v2031_v34 = vld [vmem:[%s2200_s7 + $0x144] ss:$8 sps:$4 sm:$0xff]  }
  0x17   : > { %v2033_v35 = vld [vmem:[%s2200_s7 + $0x40] ss:$8 sps:$4 sm:$0xff]   ;;  %v2035_v37 = vld [vmem:[%s2200_s7 + $0x54] ss:$8 sps:$4 sm:$0xff]   ;;  %v2039_v39 = vld [vmem:[%s2200_s7 + $0x50] ss:$8 sps:$4 sm:$0xff]  }
  0x18   : > { %962 = vmatpush1.bf16.msra.mxu0 %v1993_v5  ;;  %1951 = vmatpush1.bf16.msra.mxu1 %v1993_v5  ;;  %v2034_v36 = vld [vmem:[%s2200_s7 + $0x140] ss:$8 sps:$4 sm:$0xff]   ;;  %v2037_v38 = vld [vmem:[%s2200_s7 + $0x154] ss:$8 sps:$4 sm:$0xff]   ;;  %v2040_v40 = vld [vmem:[%s2200_s7 + $0x150] ss:$8 sps:$4 sm:$0xff]  }
  0x19   : > { %963 = vmatprep.subr.bf16.mxu0 %v2125_v1  ;;  %1936 = vmatprep.subr.bf16.mxu1 %v2125_v1  ;;  %v2041_v41 = vld [vmem:[%s2200_s7 + $0x64] ss:$8 sps:$4 sm:$0xff]   ;;  %v2045_v43 = vld [vmem:[%s2200_s7 + $0x60] ss:$8 sps:$4 sm:$0xff]   ;;  %v2047_v45 = vld [vmem:[%s2200_s7 + $0x74] ss:$8 sps:$4 sm:$0xff]  }
  0x1a   : > { %v2043_v42 = vld [vmem:[%s2200_s7 + $0x164] ss:$8 sps:$4 sm:$0xff]   ;;  %v2046_v44 = vld [vmem:[%s2200_s7 + $0x160] ss:$8 sps:$4 sm:$0xff]   ;;  %v2049_v46 = vld [vmem:[%s2200_s7 + $0x174] ss:$8 sps:$4 sm:$0xff]  }
  0x1b   : > { %v2051_v47 = vld [vmem:[%s2200_s7 + $0x70] ss:$8 sps:$4 sm:$0xff]   ;;  %v2053_v49 = vld [vmem:[%s2200_s7 + $0x84] ss:$8 sps:$4 sm:$0xff]   ;;  %v2057_v51 = vld [vmem:[%s2200_s7 + $0x80] ss:$8 sps:$4 sm:$0xff]  }
  0x1c   : > { %964 = vmatpush1.bf16.msra.mxu0 %v1994_v7  ;;  %1952 = vmatpush1.bf16.msra.mxu1 %v1994_v7  ;;  %v2052_v48 = vld [vmem:[%s2200_s7 + $0x170] ss:$8 sps:$4 sm:$0xff]   ;;  %v2055_v50 = vld [vmem:[%s2200_s7 + $0x184] ss:$8 sps:$4 sm:$0xff]   ;;  %v2058_v52 = vld [vmem:[%s2200_s7 + $0x180] ss:$8 sps:$4 sm:$0xff]  }
  0x1d   : > { %965 = vmatprep.subr.bf16.mxu0 %v2125_v1  ;;  %1937 = vmatprep.subr.bf16.mxu1 %v2125_v1  ;;  %v2059_v53 = vld [vmem:[%s2200_s7 + $0x94] ss:$8 sps:$4 sm:$0xff]   ;;  %v2063_v55 = vld [vmem:[%s2200_s7 + $0x90] ss:$8 sps:$4 sm:$0xff]   ;;  %v2065_v57 = vld [vmem:[%s2200_s7 + $0xa4] ss:$8 sps:$4 sm:$0xff]  }
  0x1e   : > { %v2061_v54 = vld [vmem:[%s2200_s7 + $0x194] ss:$8 sps:$4 sm:$0xff]   ;;  %v2064_v56 = vld [vmem:[%s2200_s7 + $0x190] ss:$8 sps:$4 sm:$0xff]   ;;  %v2067_v58 = vld [vmem:[%s2200_s7 + $0x1a4] ss:$8 sps:$4 sm:$0xff]  }
  0x1f   : > { %v2069_v59 = vld [vmem:[%s2200_s7 + $0xa0] ss:$8 sps:$4 sm:$0xff]   ;;  %v2071_v61 = vld [vmem:[%s2200_s7 + $0xb4] ss:$8 sps:$4 sm:$0xff]   ;;  %v2075_v63 = vld [vmem:[%s2200_s7 + $0xb0] ss:$8 sps:$4 sm:$0xff]  }
  0x20   : > { %966 = vmatpush1.bf16.msra.mxu0 %v1995_v9  ;;  %1953 = vmatpush1.bf16.msra.mxu1 %v1995_v9  ;;  %v2070_v60 = vld [vmem:[%s2200_s7 + $0x1a0] ss:$8 sps:$4 sm:$0xff]   ;;  %v2073_v62 = vld [vmem:[%s2200_s7 + $0x1b4] ss:$8 sps:$4 sm:$0xff]   ;;  %v2076_v0 = vld [vmem:[%s2200_s7 + $0x1b0] ss:$8 sps:$4 sm:$0xff]  }
  0x21   : > { %967 = vmatprep.subr.bf16.mxu0 %v2125_v1  ;;  %1938 = vmatprep.subr.bf16.mxu1 %v2125_v1  ;;  %v2079_v2 = vld [vmem:[%s2200_s7 + $0x1c4] ss:$8 sps:$4 sm:$0xff]   ;;  %v2081_v3 = vld [vmem:[%s2200_s7 + $0xc0] ss:$8 sps:$4 sm:$0xff]   ;;  %v2083_v5 = vld [vmem:[%s2200_s7 + $0xd4] ss:$8 sps:$4 sm:$0xff]  }
  0x22   : > { %v2082_v4 = vld [vmem:[%s2200_s7 + $0x1c0] ss:$8 sps:$4 sm:$0xff]   ;;  %v2085_v6 = vld [vmem:[%s2200_s7 + $0x1d4] ss:$8 sps:$4 sm:$0xff]   ;;  %v2087_v7 = vld [vmem:[%s2200_s7 + $0xd0] ss:$8 sps:$4 sm:$0xff]  }
  0x23   : > { %v2088_v8 = vld [vmem:[%s2200_s7 + $0x1d0] ss:$8 sps:$4 sm:$0xff]   ;;  %v2089_v9 = vld [vmem:[%s2200_s7 + $0xe4] ss:$8 sps:$4 sm:$0xff]  }
  0x24   : > { %968 = vmatpush1.bf16.msra.mxu0 %v1996_v10  ;;  %1954 = vmatpush1.bf16.msra.mxu1 %v1996_v10  ;;  %v2091_v10 = vld [vmem:[%s2200_s7 + $0x1e4] ss:$8 sps:$4 sm:$0xff]  }
  0x25   : > { %969 = vmatprep.subr.bf16.mxu0 %v2125_v1  ;;  %1939 = vmatprep.subr.bf16.mxu1 %v2125_v1 }
  0x28   : > { %970 = vmatpush1.bf16.msra.mxu0 %v1997_v11  ;;  %1955 = vmatpush1.bf16.msra.mxu1 %v1997_v11  ;;  %v2093_v11 = vld [vmem:[%s2200_s7 + $0xe0] ss:$8 sps:$4 sm:$0xff]  }
  0x29   : > { %971 = vmatprep.subr.bf16.mxu0 %v2125_v1  ;;  %1940 = vmatprep.subr.bf16.mxu1 %v2125_v1 }
  0x2c   : > { %972 = vmatpush1.bf16.msra.mxu0 %v1998_v12  ;;  %1956 = vmatpush1.bf16.msra.mxu1 %v1998_v12  ;;  %v2094_v12 = vld [vmem:[%s2200_s7 + $0x1e0] ss:$8 sps:$4 sm:$0xff]  }
  0x2d   : > { %973 = vmatprep.subr.bf16.mxu0 %v2125_v1  ;;  %1941 = vmatprep.subr.bf16.mxu1 %v2125_v1 }
  0x30   : > { %974 = vmatpush1.bf16.msra.mxu0 %v1999_v13  ;;  %1957 = vmatpush1.bf16.msra.mxu1 %v1999_v13  ;;  %v2095_v13 = vld [vmem:[%s2200_s7 + $0xf4] ss:$8 sps:$4 sm:$0xff]  }
  0x31   : > { %975 = vmatprep.subr.bf16.mxu0 %v2125_v1  ;;  %1942 = vmatprep.subr.bf16.mxu1 %v2125_v1 }
  0x34   : > { %976 = vmatpush1.bf16.msra.mxu0 %v2000_v14  ;;  %1958 = vmatpush1.bf16.msra.mxu1 %v2000_v14  ;;  %v2097_v14 = vld [vmem:[%s2200_s7 + $0x1f4] ss:$8 sps:$4 sm:$0xff]  }
  0x35   : > { %977 = vmatprep.subr.bf16.mxu0 %v2125_v1  ;;  %1943 = vmatprep.subr.bf16.mxu1 %v2125_v1 }
  0x38   : > { %978 = vmatpush1.bf16.msra.mxu0 %v2001_v15  ;;  %1959 = vmatpush1.bf16.msra.mxu1 %v2001_v15  ;;  %v2099_v15 = vld [vmem:[%s2200_s7 + $0xf0] ss:$8 sps:$4 sm:$0xff]  }
  0x39   : > { %979 = vmatprep.subr.bf16.mxu0 %v2125_v1  ;;  %1944 = vmatprep.subr.bf16.mxu1 %v2125_v1 }
  0x3c   : > { %980 = vmatpush1.bf16.msra.mxu0 %v2002_v16  ;;  %1960 = vmatpush1.bf16.msra.mxu1 %v2002_v16  ;;  %v2100_v16 = vld [vmem:[%s2200_s7 + $0x1f0] ss:$8 sps:$4 sm:$0xff]  }
  0x3d   : > { %981 = vmatprep.subr.bf16.mxu0 %v2125_v1  ;;  %1945 = vmatprep.subr.bf16.mxu1 %v2125_v1 }
  0x40   : > { %982 = vmatpush1.bf16.msra.mxu0 %v2003_v17  ;;  %1961 = vmatpush1.bf16.msra.mxu1 %v2003_v17 }
  0x41   : > { %983 = vmatprep.subr.bf16.mxu0 %v2125_v1  ;;  %1946 = vmatprep.subr.bf16.mxu1 %v2125_v1  ;;  %v2077_v1 = vld [vmem:[%s2200_s7 + $0xc4] ss:$8 sps:$4 sm:$0xff]  }
  0x44   : > { %984 = vmatpush1.bf16.msra.mxu0 %v2004_v18  ;;  %1962 = vmatpush1.bf16.msra.mxu1 %v2004_v18  ;;  %v2326_v18 = vld [vmem:[%s2543_s2] ss:$0 sm:$0xff] }
  0x47   : > { %986 = vmatmul.mubr.bf16.vlgmr.msra.gmra.mrb[0].mxu0 %v2005_v19  ;;  %1114 = vmatmul.mubr.bf16.vlgmr.msra.gmra.mrb[0].mxu1 %v2008_v20 }
  0x48   : > { %993 = vmatprep.mubr.bf16.mxu0 %v2011_v21  ;;  %1121 = vmatprep.mubr.bf16.mxu1 %v2013_v22  ;;  %v2331_v22 = vld [vmem:[%s2544_s3] ss:$0 sm:$0xff] }
  0x4f   : > { %994 = vmatmul.mubr.bf16.gmra.mrb[4].mxu0 %v2015_v23  ;;  %1122 = vmatmul.mubr.bf16.gmra.mrb[4].mxu1 %v2016_v24 }
  0x50   : > { %1001 = vmatprep.mubr.bf16.mxu0 %v2017_v25  ;;  %1129 = vmatprep.mubr.bf16.mxu1 %v2019_v26 }
  0x57   : > { %1002 = vmatmul.mubr.bf16.gmra.mrb[8].mxu0 %v2021_v27  ;;  %1130 = vmatmul.mubr.bf16.gmra.mrb[8].mxu1 %v2022_v28 }
  0x58   : > { %1009 = vmatprep.mubr.bf16.mxu0 %v2023_v29  ;;  %1137 = vmatprep.mubr.bf16.mxu1 %v2025_v30 }
  0x5f   : > { %1010 = vmatmul.mubr.bf16.gmra.mrb[12].mxu0 %v2027_v31  ;;  %1138 = vmatmul.mubr.bf16.gmra.mrb[12].mxu1 %v2028_v32 }
  0x60   : > { %1017 = vmatprep.mubr.bf16.mxu0 %v2029_v33  ;;  %1145 = vmatprep.mubr.bf16.mxu1 %v2031_v34 }
  0x67   : > { %1018 = vmatmul.mubr.bf16.gmra.mrb[16].mxu0 %v2033_v35  ;;  %1146 = vmatmul.mubr.bf16.gmra.mrb[16].mxu1 %v2034_v36 }
  0x68   : > { %1025 = vmatprep.mubr.bf16.mxu0 %v2035_v37  ;;  %1153 = vmatprep.mubr.bf16.mxu1 %v2037_v38 }
  0x6f   : > { %1026 = vmatmul.mubr.bf16.gmra.mrb[20].mxu0 %v2039_v39  ;;  %1154 = vmatmul.mubr.bf16.gmra.mrb[20].mxu1 %v2040_v40 }
  0x70   : > { %1033 = vmatprep.mubr.bf16.mxu0 %v2041_v41  ;;  %1161 = vmatprep.mubr.bf16.mxu1 %v2043_v42 }
  0x77   : > { %1034 = vmatmul.mubr.bf16.gmra.mrb[24].mxu0 %v2045_v43  ;;  %1162 = vmatmul.mubr.bf16.gmra.mrb[24].mxu1 %v2046_v44 }
  0x78   : > { %1041 = vmatprep.mubr.bf16.mxu0 %v2047_v45  ;;  %1169 = vmatprep.mubr.bf16.mxu1 %v2049_v46 }
  0x7f   : > { %1042 = vmatmul.mubr.bf16.gmra.mrb[28].mxu0 %v2051_v47  ;;  %1170 = vmatmul.mubr.bf16.gmra.mrb[28].mxu1 %v2052_v48 }
  0x80   : > { %1049 = vmatprep.mubr.bf16.mxu0 %v2053_v49  ;;  %1177 = vmatprep.mubr.bf16.mxu1 %v2055_v50 }
  0x87   : > { %1050 = vmatmul.mubr.bf16.gmra.mrb[32].mxu0 %v2057_v51  ;;  %1178 = vmatmul.mubr.bf16.gmra.mrb[32].mxu1 %v2058_v52 }
  0x88   : > { %1057 = vmatprep.mubr.bf16.mxu0 %v2059_v53  ;;  %1185 = vmatprep.mubr.bf16.mxu1 %v2061_v54 }
  0x8f   : > { %1058 = vmatmul.mubr.bf16.gmra.mrb[36].mxu0 %v2063_v55  ;;  %1186 = vmatmul.mubr.bf16.gmra.mrb[36].mxu1 %v2064_v56 }
  0x90   : > { %1065 = vmatprep.mubr.bf16.mxu0 %v2065_v57  ;;  %1193 = vmatprep.mubr.bf16.mxu1 %v2067_v58 }
  0x97   : > { %1066 = vmatmul.mubr.bf16.gmra.mrb[40].mxu0 %v2069_v59  ;;  %1194 = vmatmul.mubr.bf16.gmra.mrb[40].mxu1 %v2070_v60 }
  0x98   : > { %1073 = vmatprep.mubr.bf16.mxu0 %v2071_v61  ;;  %1201 = vmatprep.mubr.bf16.mxu1 %v2073_v62 }
  0x9f   : > { %1074 = vmatmul.mubr.bf16.gmra.mrb[44].mxu0 %v2075_v63  ;;  %1202 = vmatmul.mubr.bf16.gmra.mrb[44].mxu1 %v2076_v0 }
  0xa0   : > { %1081 = vmatprep.mubr.bf16.mxu0 %v2077_v1  ;;  %1209 = vmatprep.mubr.bf16.mxu1 %v2079_v2 }
  0xa7   : > { %1082 = vmatmul.mubr.bf16.gmra.mrb[48].mxu0 %v2081_v3  ;;  %1210 = vmatmul.mubr.bf16.gmra.mrb[48].mxu1 %v2082_v4 }
  0xa8   : > { %1089 = vmatprep.mubr.bf16.mxu0 %v2083_v5  ;;  %1217 = vmatprep.mubr.bf16.mxu1 %v2085_v6 }
  0xaf   : > { %1090 = vmatmul.mubr.bf16.gmra.mrb[52].mxu0 %v2087_v7  ;;  %1218 = vmatmul.mubr.bf16.gmra.mrb[52].mxu1 %v2088_v8 }
  0xb0   : > { %1097 = vmatprep.mubr.bf16.mxu0 %v2089_v9  ;;  %1225 = vmatprep.mubr.bf16.mxu1 %v2091_v10 }
  0xb7   : > { %1098 = vmatmul.mubr.bf16.gmra.mrb[56].mxu0 %v2093_v11  ;;  %1226 = vmatmul.mubr.bf16.gmra.mrb[56].mxu1 %v2094_v12 }
  0xb8   : > { %1105 = vmatprep.mubr.bf16.mxu0 %v2095_v13  ;;  %1233 = vmatprep.mubr.bf16.mxu1 %v2097_v14 }
  0xbf   : > { %1106 = vmatmul.mubr.bf16.gmra.mrb[60].mxu0 %v2099_v15  ;;  %1234 = vmatmul.mubr.bf16.gmra.mrb[60].mxu1 %v2100_v16 }
 0x11a   : > { %v987_v17 = vpop.f32.mrb[0].mxu0  ;;  %v1115_v19 = vpop.f32.mrb[0].mxu1 }
 0x11b   : > { %v989_v20 = vpop.f32.mrb[1].mxu0  ;;  %v1117_v21 = vpop.f32.mrb[1].mxu1  ;;  %v1444_v25 = vmul.f32 %v2326_v18, %v987_v17  ;;  %v1476_v26 = vmul.f32 %v2326_v18, %v1115_v19 }
 0x11c   : > { %v990_v23 = vpop.f32.mrb[2].mxu0  ;;  %v1118_v24 = vpop.f32.mrb[2].mxu1 }
 0x11d   : > { %v992_v27 = vpop.f32.mrb[3].mxu0  ;;  %v1120_v28 = vpop.f32.mrb[3].mxu1  ;;  %v1515_v29 = vadd.f32 %v2331_v22, %v1444_v25  ;;  %v1547_v30 = vadd.f32 %v2331_v22, %v1476_v26  ;;  %v1445_v31 = vmul.f32 %v2326_v18, %v990_v23  ;;  %v1477_v32 = vmul.f32 %v2326_v18, %v1118_v24 }
 0x11f   : > { %v1579_v33 = vmax.f32 %v1515_v29, 0.0  ;;  %v1611_v34 = vmax.f32 %v1547_v30, 0.0  ;;  %v1516_v35 = vadd.f32 %v2331_v22, %v1445_v31  ;;  %v1548_v36 = vadd.f32 %v2331_v22, %v1477_v32 }
 0x121   : > { %1643 = vst [vmem:[%s2344_s15] sm:$0xff] %v1579_v33  ;;  %1675 = vst [vmem:[%s2344_s15 + $0x100] sm:$0xff] %v1611_v34  ;;  %v1580_v39 = vmax.f32 %v1516_v35, 0.0  ;;  %v1612_v40 = vmax.f32 %v1548_v36, 0.0 }
 0x122   : > { %v995_v37 = vpop.f32.mrb[4].mxu0  ;;  %v1123_v38 = vpop.f32.mrb[4].mxu1 }
 0x123   : > { %v997_v41 = vpop.f32.mrb[5].mxu0  ;;  %v1125_v42 = vpop.f32.mrb[5].mxu1  ;;  %1644 = vst [vmem:[%s2344_s15 + $0x8] sm:$0xff] %v1580_v39  ;;  %1676 = vst [vmem:[%s2344_s15 + $0x108] sm:$0xff] %v1612_v40  ;;  %v1446_v45 = vmul.f32 %v2326_v18, %v995_v37  ;;  %v1478_v46 = vmul.f32 %v2326_v18, %v1123_v38 }
 0x124   : > { %v998_v43 = vpop.f32.mrb[6].mxu0  ;;  %v1126_v44 = vpop.f32.mrb[6].mxu1 }
 0x125   : > { %v1000_v47 = vpop.f32.mrb[7].mxu0  ;;  %v1128_v48 = vpop.f32.mrb[7].mxu1  ;;  %v1517_v49 = vadd.f32 %v2331_v22, %v1446_v45  ;;  %v1549_v50 = vadd.f32 %v2331_v22, %v1478_v46  ;;  %v1447_v51 = vmul.f32 %v2326_v18, %v998_v43  ;;  %v1479_v52 = vmul.f32 %v2326_v18, %v1126_v44 }
 0x127   : > { %v1581_v53 = vmax.f32 %v1517_v49, 0.0  ;;  %v1613_v54 = vmax.f32 %v1549_v50, 0.0  ;;  %v1518_v55 = vadd.f32 %v2331_v22, %v1447_v51  ;;  %v1550_v56 = vadd.f32 %v2331_v22, %v1479_v52 }
 0x129   : > { %1645 = vst [vmem:[%s2344_s15 + $0x10] sm:$0xff] %v1581_v53  ;;  %1677 = vst [vmem:[%s2344_s15 + $0x110] sm:$0xff] %v1613_v54  ;;  %v1582_v59 = vmax.f32 %v1518_v55, 0.0  ;;  %v1614_v60 = vmax.f32 %v1550_v56, 0.0 }
 0x12a   : > { %v1003_v57 = vpop.f32.mrb[8].mxu0  ;;  %v1131_v58 = vpop.f32.mrb[8].mxu1 }
 0x12b   : > { %v1005_v61 = vpop.f32.mrb[9].mxu0  ;;  %v1133_v62 = vpop.f32.mrb[9].mxu1  ;;  %1646 = vst [vmem:[%s2344_s15 + $0x18] sm:$0xff] %v1582_v59  ;;  %1678 = vst [vmem:[%s2344_s15 + $0x118] sm:$0xff] %v1614_v60  ;;  %v1448_v1 = vmul.f32 %v2326_v18, %v1003_v57  ;;  %v1480_v2 = vmul.f32 %v2326_v18, %v1131_v58 }
 0x12c   : > { %v1006_v63 = vpop.f32.mrb[10].mxu0  ;;  %v1134_v0 = vpop.f32.mrb[10].mxu1 }
 0x12d   : > { %v1008_v3 = vpop.f32.mrb[11].mxu0  ;;  %v1136_v4 = vpop.f32.mrb[11].mxu1  ;;  %v1519_v5 = vadd.f32 %v2331_v22, %v1448_v1  ;;  %v1551_v6 = vadd.f32 %v2331_v22, %v1480_v2  ;;  %v1449_v7 = vmul.f32 %v2326_v18, %v1006_v63  ;;  %v1481_v8 = vmul.f32 %v2326_v18, %v1134_v0 }
 0x12f   : > { %v1583_v9 = vmax.f32 %v1519_v5, 0.0  ;;  %v1615_v10 = vmax.f32 %v1551_v6, 0.0  ;;  %v1520_v11 = vadd.f32 %v2331_v22, %v1449_v7  ;;  %v1552_v12 = vadd.f32 %v2331_v22, %v1481_v8 }
 0x131   : > { %1647 = vst [vmem:[%s2344_s15 + $0x20] sm:$0xff] %v1583_v9  ;;  %1679 = vst [vmem:[%s2344_s15 + $0x120] sm:$0xff] %v1615_v10  ;;  %v1584_v15 = vmax.f32 %v1520_v11, 0.0  ;;  %v1616_v16 = vmax.f32 %v1552_v12, 0.0 }
 0x132   : > { %v1011_v13 = vpop.f32.mrb[12].mxu0  ;;  %v1139_v14 = vpop.f32.mrb[12].mxu1 }
 0x133   : > { %v1013_v17 = vpop.f32.mrb[13].mxu0  ;;  %v1141_v19 = vpop.f32.mrb[13].mxu1  ;;  %1648 = vst [vmem:[%s2344_s15 + $0x28] sm:$0xff] %v1584_v15  ;;  %1680 = vst [vmem:[%s2344_s15 + $0x128] sm:$0xff] %v1616_v16  ;;  %v1450_v23 = vmul.f32 %v2326_v18, %v1011_v13  ;;  %v1482_v24 = vmul.f32 %v2326_v18, %v1139_v14 }
 0x134   : > { %v1014_v20 = vpop.f32.mrb[14].mxu0  ;;  %v1142_v21 = vpop.f32.mrb[14].mxu1 }
 0x135   : > { %v1016_v25 = vpop.f32.mrb[15].mxu0  ;;  %v1144_v26 = vpop.f32.mrb[15].mxu1  ;;  %v1521_v27 = vadd.f32 %v2331_v22, %v1450_v23  ;;  %v1553_v28 = vadd.f32 %v2331_v22, %v1482_v24  ;;  %v1451_v29 = vmul.f32 %v2326_v18, %v1014_v20  ;;  %v1483_v30 = vmul.f32 %v2326_v18, %v1142_v21 }
 0x137   : > { %v1585_v31 = vmax.f32 %v1521_v27, 0.0  ;;  %v1617_v32 = vmax.f32 %v1553_v28, 0.0  ;;  %v1522_v33 = vadd.f32 %v2331_v22, %v1451_v29  ;;  %v1554_v34 = vadd.f32 %v2331_v22, %v1483_v30 }
 0x139   : > { %1649 = vst [vmem:[%s2344_s15 + $0x30] sm:$0xff] %v1585_v31  ;;  %1681 = vst [vmem:[%s2344_s15 + $0x130] sm:$0xff] %v1617_v32  ;;  %v1586_v37 = vmax.f32 %v1522_v33, 0.0  ;;  %v1618_v38 = vmax.f32 %v1554_v34, 0.0 }
 0x13a   : > { %v1019_v35 = vpop.f32.mrb[16].mxu0  ;;  %v1147_v36 = vpop.f32.mrb[16].mxu1 }
 0x13b   : > { %v1021_v39 = vpop.f32.mrb[17].mxu0  ;;  %v1149_v40 = vpop.f32.mrb[17].mxu1  ;;  %1650 = vst [vmem:[%s2344_s15 + $0x38] sm:$0xff] %v1586_v37  ;;  %1682 = vst [vmem:[%s2344_s15 + $0x138] sm:$0xff] %v1618_v38  ;;  %v1452_v43 = vmul.f32 %v2326_v18, %v1019_v35  ;;  %v1484_v44 = vmul.f32 %v2326_v18, %v1147_v36 }
 0x13c   : > { %v1022_v41 = vpop.f32.mrb[18].mxu0  ;;  %v1150_v42 = vpop.f32.mrb[18].mxu1 }
 0x13d   : > { %v1024_v45 = vpop.f32.mrb[19].mxu0  ;;  %v1152_v46 = vpop.f32.mrb[19].mxu1  ;;  %v1523_v47 = vadd.f32 %v2331_v22, %v1452_v43  ;;  %v1555_v48 = vadd.f32 %v2331_v22, %v1484_v44  ;;  %v1453_v49 = vmul.f32 %v2326_v18, %v1022_v41  ;;  %v1485_v50 = vmul.f32 %v2326_v18, %v1150_v42 }
 0x13f   : > { %v1587_v51 = vmax.f32 %v1523_v47, 0.0  ;;  %v1619_v52 = vmax.f32 %v1555_v48, 0.0  ;;  %v1524_v53 = vadd.f32 %v2331_v22, %v1453_v49  ;;  %v1556_v54 = vadd.f32 %v2331_v22, %v1485_v50 }
 0x141   : > { %1651 = vst [vmem:[%s2344_s15 + $0x40] sm:$0xff] %v1587_v51  ;;  %1683 = vst [vmem:[%s2344_s15 + $0x140] sm:$0xff] %v1619_v52  ;;  %v1588_v57 = vmax.f32 %v1524_v53, 0.0  ;;  %v1620_v58 = vmax.f32 %v1556_v54, 0.0 }
 0x142   : > { %v1027_v55 = vpop.f32.mrb[20].mxu0  ;;  %v1155_v56 = vpop.f32.mrb[20].mxu1 }
 0x143   : > { %v1029_v59 = vpop.f32.mrb[21].mxu0  ;;  %v1157_v60 = vpop.f32.mrb[21].mxu1  ;;  %1652 = vst [vmem:[%s2344_s15 + $0x48] sm:$0xff] %v1588_v57  ;;  %1684 = vst [vmem:[%s2344_s15 + $0x148] sm:$0xff] %v1620_v58  ;;  %v1454_v63 = vmul.f32 %v2326_v18, %v1027_v55  ;;  %v1486_v0 = vmul.f32 %v2326_v18, %v1155_v56 }
 0x144   : > { %v1030_v61 = vpop.f32.mrb[22].mxu0  ;;  %v1158_v62 = vpop.f32.mrb[22].mxu1 }
 0x145   : > { %v1032_v1 = vpop.f32.mrb[23].mxu0  ;;  %v1160_v2 = vpop.f32.mrb[23].mxu1  ;;  %v1525_v3 = vadd.f32 %v2331_v22, %v1454_v63  ;;  %v1557_v4 = vadd.f32 %v2331_v22, %v1486_v0  ;;  %v1455_v5 = vmul.f32 %v2326_v18, %v1030_v61  ;;  %v1487_v6 = vmul.f32 %v2326_v18, %v1158_v62 }
 0x147   : > { %v1589_v7 = vmax.f32 %v1525_v3, 0.0  ;;  %v1621_v8 = vmax.f32 %v1557_v4, 0.0  ;;  %v1526_v9 = vadd.f32 %v2331_v22, %v1455_v5  ;;  %v1558_v10 = vadd.f32 %v2331_v22, %v1487_v6 }
 0x149   : > { %1653 = vst [vmem:[%s2344_s15 + $0x50] sm:$0xff] %v1589_v7  ;;  %1685 = vst [vmem:[%s2344_s15 + $0x150] sm:$0xff] %v1621_v8  ;;  %v1590_v13 = vmax.f32 %v1526_v9, 0.0  ;;  %v1622_v14 = vmax.f32 %v1558_v10, 0.0 }
 0x14a   : > { %v1035_v11 = vpop.f32.mrb[24].mxu0  ;;  %v1163_v12 = vpop.f32.mrb[24].mxu1 }
 0x14b   : > { %v1037_v15 = vpop.f32.mrb[25].mxu0  ;;  %v1165_v16 = vpop.f32.mrb[25].mxu1  ;;  %1654 = vst [vmem:[%s2344_s15 + $0x58] sm:$0xff] %v1590_v13  ;;  %1686 = vst [vmem:[%s2344_s15 + $0x158] sm:$0xff] %v1622_v14  ;;  %v1456_v20 = vmul.f32 %v2326_v18, %v1035_v11  ;;  %v1488_v21 = vmul.f32 %v2326_v18, %v1163_v12 }
 0x14c   : > { %v1038_v17 = vpop.f32.mrb[26].mxu0  ;;  %v1166_v19 = vpop.f32.mrb[26].mxu1 }
 0x14d   : > { %v1040_v23 = vpop.f32.mrb[27].mxu0  ;;  %v1168_v24 = vpop.f32.mrb[27].mxu1  ;;  %v1527_v25 = vadd.f32 %v2331_v22, %v1456_v20  ;;  %v1559_v26 = vadd.f32 %v2331_v22, %v1488_v21  ;;  %v1457_v27 = vmul.f32 %v2326_v18, %v1038_v17  ;;  %v1489_v28 = vmul.f32 %v2326_v18, %v1166_v19 }
 0x14f   : > { %v1591_v29 = vmax.f32 %v1527_v25, 0.0  ;;  %v1623_v30 = vmax.f32 %v1559_v26, 0.0  ;;  %v1528_v31 = vadd.f32 %v2331_v22, %v1457_v27  ;;  %v1560_v32 = vadd.f32 %v2331_v22, %v1489_v28 }
 0x151   : > { %1655 = vst [vmem:[%s2344_s15 + $0x60] sm:$0xff] %v1591_v29  ;;  %1687 = vst [vmem:[%s2344_s15 + $0x160] sm:$0xff] %v1623_v30  ;;  %v1592_v35 = vmax.f32 %v1528_v31, 0.0  ;;  %v1624_v36 = vmax.f32 %v1560_v32, 0.0 }
 0x152   : > { %v1043_v33 = vpop.f32.mrb[28].mxu0  ;;  %v1171_v34 = vpop.f32.mrb[28].mxu1 }
 0x153   : > { %v1045_v37 = vpop.f32.mrb[29].mxu0  ;;  %v1173_v38 = vpop.f32.mrb[29].mxu1  ;;  %1656 = vst [vmem:[%s2344_s15 + $0x68] sm:$0xff] %v1592_v35  ;;  %1688 = vst [vmem:[%s2344_s15 + $0x168] sm:$0xff] %v1624_v36  ;;  %v1458_v41 = vmul.f32 %v2326_v18, %v1043_v33  ;;  %v1490_v42 = vmul.f32 %v2326_v18, %v1171_v34 }
 0x154   : > { %v1046_v39 = vpop.f32.mrb[30].mxu0  ;;  %v1174_v40 = vpop.f32.mrb[30].mxu1 }
 0x155   : > { %v1048_v43 = vpop.f32.mrb[31].mxu0  ;;  %v1176_v44 = vpop.f32.mrb[31].mxu1  ;;  %v1529_v45 = vadd.f32 %v2331_v22, %v1458_v41  ;;  %v1561_v46 = vadd.f32 %v2331_v22, %v1490_v42  ;;  %v1459_v47 = vmul.f32 %v2326_v18, %v1046_v39  ;;  %v1491_v48 = vmul.f32 %v2326_v18, %v1174_v40 }
 0x157   : > { %v1593_v49 = vmax.f32 %v1529_v45, 0.0  ;;  %v1625_v50 = vmax.f32 %v1561_v46, 0.0  ;;  %v1530_v51 = vadd.f32 %v2331_v22, %v1459_v47  ;;  %v1562_v52 = vadd.f32 %v2331_v22, %v1491_v48 }
 0x159   : > { %1657 = vst [vmem:[%s2344_s15 + $0x70] sm:$0xff] %v1593_v49  ;;  %1689 = vst [vmem:[%s2344_s15 + $0x170] sm:$0xff] %v1625_v50  ;;  %v1594_v55 = vmax.f32 %v1530_v51, 0.0  ;;  %v1626_v56 = vmax.f32 %v1562_v52, 0.0 }
 0x15a   : > { %v1051_v53 = vpop.f32.mrb[32].mxu0  ;;  %v1179_v54 = vpop.f32.mrb[32].mxu1 }
 0x15b   : > { %v1053_v57 = vpop.f32.mrb[33].mxu0  ;;  %v1181_v58 = vpop.f32.mrb[33].mxu1  ;;  %1658 = vst [vmem:[%s2344_s15 + $0x78] sm:$0xff] %v1594_v55  ;;  %1690 = vst [vmem:[%s2344_s15 + $0x178] sm:$0xff] %v1626_v56  ;;  %v1460_v61 = vmul.f32 %v2326_v18, %v1051_v53  ;;  %v1492_v62 = vmul.f32 %v2326_v18, %v1179_v54 }
 0x15c   : > { %v1054_v59 = vpop.f32.mrb[34].mxu0  ;;  %v1182_v60 = vpop.f32.mrb[34].mxu1 }
 0x15d   : > { %v1056_v63 = vpop.f32.mrb[35].mxu0  ;;  %v1184_v0 = vpop.f32.mrb[35].mxu1  ;;  %v1531_v1 = vadd.f32 %v2331_v22, %v1460_v61  ;;  %v1563_v2 = vadd.f32 %v2331_v22, %v1492_v62  ;;  %v1461_v3 = vmul.f32 %v2326_v18, %v1054_v59  ;;  %v1493_v4 = vmul.f32 %v2326_v18, %v1182_v60 }
 0x15f   : > { %v1595_v5 = vmax.f32 %v1531_v1, 0.0  ;;  %v1627_v6 = vmax.f32 %v1563_v2, 0.0  ;;  %v1532_v7 = vadd.f32 %v2331_v22, %v1461_v3  ;;  %v1564_v8 = vadd.f32 %v2331_v22, %v1493_v4 }
 0x161   : > { %1659 = vst [vmem:[%s2344_s15 + $0x80] sm:$0xff] %v1595_v5  ;;  %1691 = vst [vmem:[%s2344_s15 + $0x180] sm:$0xff] %v1627_v6  ;;  %v1596_v11 = vmax.f32 %v1532_v7, 0.0  ;;  %v1628_v12 = vmax.f32 %v1564_v8, 0.0 }
 0x162   : > { %v1059_v9 = vpop.f32.mrb[36].mxu0  ;;  %v1187_v10 = vpop.f32.mrb[36].mxu1 }
 0x163   : > { %v1061_v13 = vpop.f32.mrb[37].mxu0  ;;  %v1189_v14 = vpop.f32.mrb[37].mxu1  ;;  %1660 = vst [vmem:[%s2344_s15 + $0x88] sm:$0xff] %v1596_v11  ;;  %1692 = vst [vmem:[%s2344_s15 + $0x188] sm:$0xff] %v1628_v12  ;;  %v1462_v17 = vmul.f32 %v2326_v18, %v1059_v9  ;;  %v1494_v19 = vmul.f32 %v2326_v18, %v1187_v10 }
 0x164   : > { %v1062_v15 = vpop.f32.mrb[38].mxu0  ;;  %v1190_v16 = vpop.f32.mrb[38].mxu1 }
 0x165   : > { %v1064_v20 = vpop.f32.mrb[39].mxu0  ;;  %v1192_v21 = vpop.f32.mrb[39].mxu1  ;;  %v1533_v23 = vadd.f32 %v2331_v22, %v1462_v17  ;;  %v1565_v24 = vadd.f32 %v2331_v22, %v1494_v19  ;;  %v1463_v25 = vmul.f32 %v2326_v18, %v1062_v15  ;;  %v1495_v26 = vmul.f32 %v2326_v18, %v1190_v16 }
 0x167   : > { %v1597_v27 = vmax.f32 %v1533_v23, 0.0  ;;  %v1629_v28 = vmax.f32 %v1565_v24, 0.0  ;;  %v1534_v29 = vadd.f32 %v2331_v22, %v1463_v25  ;;  %v1566_v30 = vadd.f32 %v2331_v22, %v1495_v26 }
 0x169   : > { %1661 = vst [vmem:[%s2344_s15 + $0x90] sm:$0xff] %v1597_v27  ;;  %1693 = vst [vmem:[%s2344_s15 + $0x190] sm:$0xff] %v1629_v28  ;;  %v1598_v33 = vmax.f32 %v1534_v29, 0.0  ;;  %v1630_v34 = vmax.f32 %v1566_v30, 0.0 }
 0x16a   : > { %v1067_v31 = vpop.f32.mrb[40].mxu0  ;;  %v1195_v32 = vpop.f32.mrb[40].mxu1 }
 0x16b   : > { %v1069_v35 = vpop.f32.mrb[41].mxu0  ;;  %v1197_v36 = vpop.f32.mrb[41].mxu1  ;;  %1662 = vst [vmem:[%s2344_s15 + $0x98] sm:$0xff] %v1598_v33  ;;  %1694 = vst [vmem:[%s2344_s15 + $0x198] sm:$0xff] %v1630_v34  ;;  %v1464_v39 = vmul.f32 %v2326_v18, %v1067_v31  ;;  %v1496_v40 = vmul.f32 %v2326_v18, %v1195_v32 }
 0x16c   : > { %v1070_v37 = vpop.f32.mrb[42].mxu0  ;;  %v1198_v38 = vpop.f32.mrb[42].mxu1 }
 0x16d   : > { %v1072_v41 = vpop.f32.mrb[43].mxu0  ;;  %v1200_v42 = vpop.f32.mrb[43].mxu1  ;;  %v1535_v43 = vadd.f32 %v2331_v22, %v1464_v39  ;;  %v1567_v44 = vadd.f32 %v2331_v22, %v1496_v40  ;;  %v1465_v45 = vmul.f32 %v2326_v18, %v1070_v37  ;;  %v1497_v46 = vmul.f32 %v2326_v18, %v1198_v38 }
 0x16f   : > { %v1599_v47 = vmax.f32 %v1535_v43, 0.0  ;;  %v1631_v48 = vmax.f32 %v1567_v44, 0.0  ;;  %v1536_v49 = vadd.f32 %v2331_v22, %v1465_v45  ;;  %v1568_v50 = vadd.f32 %v2331_v22, %v1497_v46 }
 0x171   : > { %1663 = vst [vmem:[%s2344_s15 + $0xa0] sm:$0xff] %v1599_v47  ;;  %1695 = vst [vmem:[%s2344_s15 + $0x1a0] sm:$0xff] %v1631_v48  ;;  %v1600_v53 = vmax.f32 %v1536_v49, 0.0  ;;  %v1632_v54 = vmax.f32 %v1568_v50, 0.0 }
 0x172   : > { %v1075_v51 = vpop.f32.mrb[44].mxu0  ;;  %v1203_v52 = vpop.f32.mrb[44].mxu1 }
 0x173   : > { %v1077_v55 = vpop.f32.mrb[45].mxu0  ;;  %v1205_v56 = vpop.f32.mrb[45].mxu1  ;;  %1664 = vst [vmem:[%s2344_s15 + $0xa8] sm:$0xff] %v1600_v53  ;;  %1696 = vst [vmem:[%s2344_s15 + $0x1a8] sm:$0xff] %v1632_v54  ;;  %v1466_v59 = vmul.f32 %v2326_v18, %v1075_v51  ;;  %v1498_v60 = vmul.f32 %v2326_v18, %v1203_v52 }
 0x174   : > { %v1078_v57 = vpop.f32.mrb[46].mxu0  ;;  %v1206_v58 = vpop.f32.mrb[46].mxu1 }
 0x175   : > { %v1080_v61 = vpop.f32.mrb[47].mxu0  ;;  %v1208_v62 = vpop.f32.mrb[47].mxu1  ;;  %v1537_v63 = vadd.f32 %v2331_v22, %v1466_v59  ;;  %v1569_v0 = vadd.f32 %v2331_v22, %v1498_v60  ;;  %v1467_v1 = vmul.f32 %v2326_v18, %v1078_v57  ;;  %v1499_v2 = vmul.f32 %v2326_v18, %v1206_v58 }
 0x177   : > { %v1601_v3 = vmax.f32 %v1537_v63, 0.0  ;;  %v1633_v4 = vmax.f32 %v1569_v0, 0.0  ;;  %v1538_v5 = vadd.f32 %v2331_v22, %v1467_v1  ;;  %v1570_v6 = vadd.f32 %v2331_v22, %v1499_v2 }
 0x179   : > { %1665 = vst [vmem:[%s2344_s15 + $0xb0] sm:$0xff] %v1601_v3  ;;  %1697 = vst [vmem:[%s2344_s15 + $0x1b0] sm:$0xff] %v1633_v4  ;;  %v1602_v9 = vmax.f32 %v1538_v5, 0.0  ;;  %v1634_v10 = vmax.f32 %v1570_v6, 0.0 }
 0x17a   : > { %v1083_v7 = vpop.f32.mrb[48].mxu0  ;;  %v1211_v8 = vpop.f32.mrb[48].mxu1 }
 0x17b   : > { %v1085_v11 = vpop.f32.mrb[49].mxu0  ;;  %v1213_v12 = vpop.f32.mrb[49].mxu1  ;;  %1666 = vst [vmem:[%s2344_s15 + $0xb8] sm:$0xff] %v1602_v9  ;;  %1698 = vst [vmem:[%s2344_s15 + $0x1b8] sm:$0xff] %v1634_v10  ;;  %v1468_v15 = vmul.f32 %v2326_v18, %v1083_v7  ;;  %v1500_v16 = vmul.f32 %v2326_v18, %v1211_v8 }
 0x17c   : > { %v1086_v13 = vpop.f32.mrb[50].mxu0  ;;  %v1214_v14 = vpop.f32.mrb[50].mxu1 }
 0x17d   : > { %v1088_v17 = vpop.f32.mrb[51].mxu0  ;;  %v1216_v19 = vpop.f32.mrb[51].mxu1  ;;  %v1539_v20 = vadd.f32 %v2331_v22, %v1468_v15  ;;  %v1571_v21 = vadd.f32 %v2331_v22, %v1500_v16  ;;  %v1469_v23 = vmul.f32 %v2326_v18, %v1086_v13  ;;  %v1501_v24 = vmul.f32 %v2326_v18, %v1214_v14 }
 0x17f   : > { %v1603_v25 = vmax.f32 %v1539_v20, 0.0  ;;  %v1635_v26 = vmax.f32 %v1571_v21, 0.0  ;;  %v1540_v27 = vadd.f32 %v2331_v22, %v1469_v23  ;;  %v1572_v28 = vadd.f32 %v2331_v22, %v1501_v24 }
 0x181   : > { %1667 = vst [vmem:[%s2344_s15 + $0xc0] sm:$0xff] %v1603_v25  ;;  %1699 = vst [vmem:[%s2344_s15 + $0x1c0] sm:$0xff] %v1635_v26  ;;  %v1604_v31 = vmax.f32 %v1540_v27, 0.0  ;;  %v1636_v32 = vmax.f32 %v1572_v28, 0.0 }
 0x182   : > { %v1091_v29 = vpop.f32.mrb[52].mxu0  ;;  %v1219_v30 = vpop.f32.mrb[52].mxu1 }
 0x183   : > { %v1093_v33 = vpop.f32.mrb[53].mxu0  ;;  %v1221_v34 = vpop.f32.mrb[53].mxu1  ;;  %1668 = vst [vmem:[%s2344_s15 + $0xc8] sm:$0xff] %v1604_v31  ;;  %1700 = vst [vmem:[%s2344_s15 + $0x1c8] sm:$0xff] %v1636_v32  ;;  %v1470_v37 = vmul.f32 %v2326_v18, %v1091_v29  ;;  %v1502_v38 = vmul.f32 %v2326_v18, %v1219_v30 }
 0x184   : > { %v1094_v35 = vpop.f32.mrb[54].mxu0  ;;  %v1222_v36 = vpop.f32.mrb[54].mxu1 }
 0x185   : > { %v1096_v39 = vpop.f32.mrb[55].mxu0  ;;  %v1224_v40 = vpop.f32.mrb[55].mxu1  ;;  %v1541_v41 = vadd.f32 %v2331_v22, %v1470_v37  ;;  %v1573_v42 = vadd.f32 %v2331_v22, %v1502_v38  ;;  %v1471_v43 = vmul.f32 %v2326_v18, %v1094_v35  ;;  %v1503_v44 = vmul.f32 %v2326_v18, %v1222_v36 }
 0x187   : > { %v1605_v45 = vmax.f32 %v1541_v41, 0.0  ;;  %v1637_v46 = vmax.f32 %v1573_v42, 0.0  ;;  %v1542_v47 = vadd.f32 %v2331_v22, %v1471_v43  ;;  %v1574_v48 = vadd.f32 %v2331_v22, %v1503_v44 }
 0x189   : > { %1669 = vst [vmem:[%s2344_s15 + $0xd0] sm:$0xff] %v1605_v45  ;;  %1701 = vst [vmem:[%s2344_s15 + $0x1d0] sm:$0xff] %v1637_v46  ;;  %v1606_v51 = vmax.f32 %v1542_v47, 0.0  ;;  %v1638_v52 = vmax.f32 %v1574_v48, 0.0 }
 0x18a   : > { %v1099_v49 = vpop.f32.mrb[56].mxu0  ;;  %v1227_v50 = vpop.f32.mrb[56].mxu1 }
 0x18b   : > { %v1101_v53 = vpop.f32.mrb[57].mxu0  ;;  %v1229_v54 = vpop.f32.mrb[57].mxu1  ;;  %1670 = vst [vmem:[%s2344_s15 + $0xd8] sm:$0xff] %v1606_v51  ;;  %1702 = vst [vmem:[%s2344_s15 + $0x1d8] sm:$0xff] %v1638_v52  ;;  %v1472_v57 = vmul.f32 %v2326_v18, %v1099_v49  ;;  %v1504_v58 = vmul.f32 %v2326_v18, %v1227_v50 }
 0x18c   : > { %v1102_v55 = vpop.f32.mrb[58].mxu0  ;;  %v1230_v56 = vpop.f32.mrb[58].mxu1 }
 0x18d   : > { %v1104_v59 = vpop.f32.mrb[59].mxu0  ;;  %v1232_v60 = vpop.f32.mrb[59].mxu1  ;;  %v1543_v61 = vadd.f32 %v2331_v22, %v1472_v57  ;;  %v1575_v62 = vadd.f32 %v2331_v22, %v1504_v58  ;;  %v1473_v63 = vmul.f32 %v2326_v18, %v1102_v55  ;;  %v1505_v0 = vmul.f32 %v2326_v18, %v1230_v56 }
 0x18f   : > { %v1607_v1 = vmax.f32 %v1543_v61, 0.0  ;;  %v1639_v2 = vmax.f32 %v1575_v62, 0.0  ;;  %v1544_v3 = vadd.f32 %v2331_v22, %v1473_v63  ;;  %v1576_v4 = vadd.f32 %v2331_v22, %v1505_v0 }
 0x191   : > { %1671 = vst [vmem:[%s2344_s15 + $0xe0] sm:$0xff] %v1607_v1  ;;  %1703 = vst [vmem:[%s2344_s15 + $0x1e0] sm:$0xff] %v1639_v2  ;;  %v1608_v7 = vmax.f32 %v1544_v3, 0.0  ;;  %v1640_v8 = vmax.f32 %v1576_v4, 0.0 }
 0x192   : > { %v1107_v5 = vpop.f32.mrb[60].mxu0  ;;  %v1235_v6 = vpop.f32.mrb[60].mxu1 }
 0x193   : > { %v1109_v9 = vpop.f32.mrb[61].mxu0  ;;  %v1237_v10 = vpop.f32.mrb[61].mxu1  ;;  %1672 = vst [vmem:[%s2344_s15 + $0xe8] sm:$0xff] %v1608_v7  ;;  %1704 = vst [vmem:[%s2344_s15 + $0x1e8] sm:$0xff] %v1640_v8  ;;  %v1474_v13 = vmul.f32 %v2326_v18, %v1107_v5  ;;  %v1506_v14 = vmul.f32 %v2326_v18, %v1235_v6 }
 0x194   : > { %v1110_v11 = vpop.f32.mrb[62].mxu0  ;;  %v1238_v12 = vpop.f32.mrb[62].mxu1 }
 0x195   : > { %v1112_v15 = vpop.f32.mrb[63].mxu0  ;;  %v1240_v16 = vpop.f32.mrb[63].mxu1  ;;  %v1545_v17 = vadd.f32 %v2331_v22, %v1474_v13  ;;  %v1577_v19 = vadd.f32 %v2331_v22, %v1506_v14  ;;  %v1475_v20 = vmul.f32 %v2326_v18, %v1110_v11  ;;  %v1507_v21 = vmul.f32 %v2326_v18, %v1238_v12 }
 0x197   : > { %v1609_v23 = vmax.f32 %v1545_v17, 0.0  ;;  %v1641_v24 = vmax.f32 %v1577_v19, 0.0  ;;  %v1546_v25 = vadd.f32 %v2331_v22, %v1475_v20  ;;  %v1578_v26 = vadd.f32 %v2331_v22, %v1507_v21 }
 0x199   : > { %1673 = vst [vmem:[%s2344_s15 + $0xf0] sm:$0xff] %v1609_v23  ;;  %1705 = vst [vmem:[%s2344_s15 + $0x1f0] sm:$0xff] %v1641_v24  ;;  %v1610_v27 = vmax.f32 %v1546_v25, 0.0  ;;  %v1642_v28 = vmax.f32 %v1578_v26, 0.0 }
 0x19b   : > { %1674 = vst [vmem:[%s2344_s15 + $0xf8] sm:$0xff] %v1610_v27  ;;  %1706 = vst [vmem:[%s2344_s15 + $0x1f8] sm:$0xff] %v1642_v28 }
 0x19c PF: > { %s14_s17 = sadd.s32 1, %s2123_s17   ;;  %s2546_s15 = smov %s2119_s16 }
 0x19d   : > { %p11_p5 = scmp.ge.s32.totalorder %s14_s17, 6   ;;  %s2547_s16 = smov %s2549_s18 }
 0x19f   :  { %13 = sbr.rel (!%p11_p5) target bundleno = 2 (0x2), region = 83 }

</bundles_post_ra>
